<compile_context>
chip_gen: v5e
topology: v5e:2x2
jax: 0.10.0
libtpu: 0.0.40
codegen_flags: <defaults>
</compile_context>

<pallas_src>
import math

import jax
import jax.numpy as jnp
from jax.experimental import pallas as pl
from jax.experimental.pallas import tpu as pltpu


def make_positional_encoding(d_model: int, max_len: int = 5120) -> jnp.ndarray:
    """Reproduces the PyTorch buffer: pe of shape (1, d_model, max_len)."""
    assert d_model % 2 == 0, "PositionalEncoding assumes an even d_model"
    position = jnp.arange(max_len, dtype=jnp.float32)[:, None]          # (max_len, 1)
    div_term = jnp.exp(
        jnp.arange(0, d_model, 2, dtype=jnp.float32)
        * (-math.log(10000.0) / d_model)
    )                                                                    # (d_model//2,)
    pe = jnp.zeros((max_len, d_model), dtype=jnp.float32)
    pe = pe.at[:, 0::2].set(jnp.sin(position * div_term))
    pe = pe.at[:, 1::2].set(jnp.cos(position * div_term))
    pe = pe.T                                                            # (d_model, max_len)
    return pe[None, :, :]                                                # (1, d_model, max_len)


def _pe_add_kernel(x_ref, pe_ref, o_ref):
    # x block: (B_TILE, rows_tile, 128); pe block: (1, rows_tile, 128).
    # Leading dim-1 broadcasts over the batch tile; lane-dense elementwise add.
    o_ref[...] = (x_ref[...] + pe_ref[...]).astype(o_ref.dtype)


def _sublane_multiple(dtype) -> int:
    # Native sublane packing: f32 -> 8, bf16/f16 -> 16, int8/fp8 -> 32.
    return {4: 8, 2: 16, 1: 32}.get(jnp.dtype(dtype).itemsize, 8)


def _default_target_block_elems() -> int:
    """Per-block element budget, tuned per TPU generation."""
    try:
        kind = jax.devices()[0].device_kind.lower()
    except Exception:
        kind = ""
    if "v7" in kind:
        return 1024 * 1024   # ~4 MiB f32 blocks: hides step overhead at 3.2 TB/s HBM
    if "v6" in kind:
        return 512 * 1024    # ~2 MiB blocks: ~86% of v6e HBM roofline, fewer steps
    return 256 * 1024        # ~1 MiB blocks: already <12% overhead at v5e's ~820 GB/s


def positional_encoding_forward(
    x: jnp.ndarray,
    pe: jnp.ndarray,
    *,
    pe_flat: jnp.ndarray | None = None,
    donate_x: bool = False,
    force_pallas: bool = False,
    target_block_elems: int | None = None,
    min_pallas_bytes: int = 1 << 20,
) -> jnp.ndarray:
    """x: (B, d_model, L), pe: (1, d_model, max_len) -> (B, d_model, L)."""
    B, D, L = x.shape
    assert pe.ndim == 3 and pe.shape[0] == 1 and pe.shape[1] == D and pe.shape[2] >= L

    itemsize = jnp.dtype(x.dtype).itemsize
    total_bytes = x.size * itemsize
    N = D * L

    if (not force_pallas and total_bytes < min_pallas_bytes) or N % 128 != 0:
        # Tiny problems: launch + per-step overhead dominates -> fused XLA add.
        # TODO(synk): masked-store Pallas path for D*L % 128 != 0 shapes.
        return (x + pe[:, :, :L]).astype(x.dtype)

    rows = N // 128
    if pe_flat is None:
        # Hot-path callers should pass a cached pe_flat (see PositionalEncoding
        # class) so this slice/reshape/cast isn't re-materialized every call.
        pe_flat = pe[:, :, :L].reshape(1, rows, 128).astype(x.dtype)
    else:
        assert pe_flat.shape == (1, rows, 128) and pe_flat.dtype == x.dtype

    # Lane-dense view: row-major flatten of (D, L) reinterpreted as (rows, 128).
    xr = x.reshape(B, rows, 128)

    if target_block_elems is None:
        target_block_elems = _default_target_block_elems()
    sub = _sublane_multiple(x.dtype)
    max_rows = max(target_block_elems // 128, sub)

    # Row tiling: full extent if it fits the budget (always legal), otherwise
    # the largest sublane-aligned tile under budget. Partial trailing blocks
    # are handled by the cdiv grid (no divisor hunt, no XLA fallback).
    if rows <= max_rows:
        rows_tile = rows
    else:
        rows_tile = (max_rows // sub) * sub
    grid_rows = pl.cdiv(rows, rows_tile)

    # Batch folding: when D*L is small, pack several batch elements per block
    # so the kernel isn't pure grid-step overhead for large B.
    b_tile = max(1, min(B, target_block_elems // (rows_tile * 128)))

    # v7x megacore: expose >= 2 grid steps of parallel work when possible.
    if grid_rows == 1 and pl.cdiv(B, b_tile) == 1 and B > 1:
        b_tile = max(1, B // 2)
    grid_b = pl.cdiv(B, b_tile)

    grid = (grid_rows, grid_b)  # batch trailing -> pe block resident across batch steps

    x_block_bytes = b_tile * rows_tile * 128 * itemsize
    pe_block_bytes = rows_tile * 128 * itemsize
    # Double-buffered x-in / pe-in / out, with headroom; capped for v7x's 64 MiB.
    vmem_limit = int(min(48 << 20, max(32 << 20, 4 * (2 * x_block_bytes + pe_block_bytes))))

    out = pl.pallas_call(
        _pe_add_kernel,
        out_shape=jax.ShapeDtypeStruct((B, rows, 128), x.dtype),
        grid_spec=pltpu.PrefetchScalarGridSpec(
            num_scalar_prefetch=0,
            grid=grid,
            in_specs=[
                pl.BlockSpec((b_tile, rows_tile, 128), lambda i, b: (b, i, 0)),
                pl.BlockSpec((1, rows_tile, 128), lambda i, b: (0, i, 0)),
            ],
            out_specs=pl.BlockSpec((b_tile, rows_tile, 128), lambda i, b: (b, i, 0)),
        ),
        compiler_params=pltpu.CompilerParams(
            # Both axes independent -> megacore sharding on v7x (2 TCs).
            dimension_semantics=("parallel", "parallel"),
            vmem_limit_bytes=vmem_limit,
        ),
        # Only alias when the caller really donates x; otherwise XLA inserts a
        # defensive copy that erases the kernel win.
        input_output_aliases=({0: 0} if donate_x else {}),
    )(xr, pe_flat)

    return out.reshape(B, D, L)


class PositionalEncoding:
    """JAX/Pallas equivalent of the PyTorch PositionalEncoding module.

    Caches the lane-dense flattened pe view per (L, dtype) so the per-call
    slice/reshape/cast does not re-read and re-write the table in HBM on
    every forward call.
    """

    def __init__(self, d_model: int, max_len: int = 5120):
        self.d_model = d_model
        self.max_len = max_len
        self.pe = make_positional_encoding(d_model, max_len)   # (1, D, max_len) f32
        self._pe_flat_cache: dict = {}

    def _get_pe_flat(self, L: int, dtype):
        if (self.d_model * L) % 128 != 0:
            return None
        key = (int(L), jnp.dtype(dtype).name)
        pe_flat = self._pe_flat_cache.get(key)
        if pe_flat is None:
            rows = (self.d_model * L) // 128
            pe_flat = self.pe[:, :, :L].reshape(1, rows, 128).astype(dtype)
            self._pe_flat_cache[key] = pe_flat
        return pe_flat

    def __call__(self, x: jnp.ndarray, *, force_pallas: bool = False,
                 donate_x: bool = False) -> jnp.ndarray:
        B, D, L = x.shape
        assert D == self.d_model and L <= self.max_len
        return positional_encoding_forward(
            x, self.pe,
            pe_flat=self._get_pe_flat(L, x.dtype),
            force_pallas=force_pallas,
            donate_x=donate_x,
        )


if __name__ == "__main__":
    # Small shapes consistent with the module: batch=2, d_model=32, seq len=16.
    B, D, L = 2, 32, 16
    MAX_LEN = 128

    key = jax.random.PRNGKey(0)
    x = jax.random.normal(key, (B, D, L), dtype=jnp.float32)

    module = PositionalEncoding(D, MAX_LEN)
    ref = x + module.pe[:, :, :L]   # plain JAX broadcast add == PyTorch forward

    # Pallas path (tiny shape, so force past the small-problem short-circuit).
    out = jax.block_until_ready(module(x, force_pallas=True))
    assert out.shape == (B, D, L)
    assert jnp.allclose(out, ref, atol=1e-6), "pallas path mismatch vs reference"

    # Second call exercises the cached pe_flat path.
    out_cached = jax.block_until_ready(module(x, force_pallas=True))
    assert jnp.allclose(out_cached, ref, atol=1e-6), "cached-pe path mismatch"

    # Default dispatch: tiny problem -> fused XLA add short-circuit.
    out2 = jax.block_until_ready(module(x))
    assert jnp.allclose(out2, ref, atol=1e-6), "fallback path mismatch vs reference"

    # Slightly larger shape exercising batch folding + full-extent row tiling.
    B2, D2, L2 = 4, 64, 256
    x2 = jax.random.normal(jax.random.PRNGKey(1), (B2, D2, L2), dtype=jnp.float32)
    module2 = PositionalEncoding(D2, max_len=L2)
    ref2 = x2 + module2.pe[:, :, :L2]
    out3 = jax.block_until_ready(module2(x2, force_pallas=True))
    assert jnp.allclose(out3, ref2, atol=1e-6), "batch-folded path mismatch"

    print("KERNEL_OK")
</pallas_src>

<mosaic_0001>
module attributes {stable_mosaic.version = 11 : i64} {
  func.func @_pe_add_kernel(%arg0: i32, %arg1: i32, %arg2: memref<1x4x128xf32, #tpu.memory_space<vmem>>, %arg3: memref<1x4x128xf32, #tpu.memory_space<vmem>>, %arg4: memref<1x4x128xf32, #tpu.memory_space<vmem>>) attributes {dimension_semantics = [#tpu.dimension_semantics<parallel>, #tpu.dimension_semantics<parallel>], iteration_bounds = array<i64: 1, 2>, scalar_prefetch = 0 : i64, scratch_operands = 0 : i64, tpu.core_type = #tpu.core_type<tc>, window_params = [{transform_indices = @transform_0, window_bounds = array<i64: 1, 4, 128>}, {transform_indices = @transform_1, window_bounds = array<i64: 1, 4, 128>}, {transform_indices = @transform_2, window_bounds = array<i64: 1, 4, 128>}]} {
    %c0 = arith.constant 0 : index
    %c0_0 = arith.constant 0 : index
    %c0_1 = arith.constant 0 : index
    %0 = vector.load %arg2[%c0, %c0_0, %c0_1] : memref<1x4x128xf32, #tpu.memory_space<vmem>>, vector<1x4x128xf32>
    %c0_2 = arith.constant 0 : index
    %c0_3 = arith.constant 0 : index
    %c0_4 = arith.constant 0 : index
    %1 = vector.load %arg3[%c0_2, %c0_3, %c0_4] : memref<1x4x128xf32, #tpu.memory_space<vmem>>, vector<1x4x128xf32>
    %2 = arith.addf %0, %1 : vector<1x4x128xf32>
    %c0_5 = arith.constant 0 : index
    %c0_6 = arith.constant 0 : index
    %c0_7 = arith.constant 0 : index
    %3 = vector.load %arg4[%c0_5, %c0_6, %c0_7] : memref<1x4x128xf32, #tpu.memory_space<vmem>>, vector<1x4x128xf32>
    tpu.vector_store %arg4[%c0_5, %c0_6, %c0_7], %2 {strides = array<i32>} : memref<1x4x128xf32, #tpu.memory_space<vmem>>, vector<1x4x128xf32>,
    return
  }
  func.func @transform_0(%arg0: i32, %arg1: i32) -> (i32, i32, i32) {
    %c0_i32 = arith.constant 0 : i32
    %c0_i32_0 = arith.constant 0 : i32
    return %arg1, %arg0, %c0_i32 : i32, i32, i32
  }
  func.func @transform_1(%arg0: i32, %arg1: i32) -> (i32, i32, i32) {
    %c0_i32 = arith.constant 0 : i32
    %c0_i32_0 = arith.constant 0 : i32
    %c0_i32_1 = arith.constant 0 : i32
    return %c0_i32, %arg0, %c0_i32_0 : i32, i32, i32
  }
  func.func @transform_2(%arg0: i32, %arg1: i32) -> (i32, i32, i32) {
    %c0_i32 = arith.constant 0 : i32
    %c0_i32_0 = arith.constant 0 : i32
    return %arg1, %arg0, %c0_i32 : i32, i32, i32
  }
}

</mosaic_0001>

<bundles_post_ra>
// kernel: tpu_custom_call.1
= control target key start
LH: loop header
LB: loop body
LE: loop exit
PB: predicated region body
PF: predicated region fallthrough
CT: control target
= control target key end

     0   :  { %7 = vsyncpa [#allocation3], 0  ;;  %s714_s0 = inlined_call_operand.hbm [shape: f32[2,4,128], index: 0, kind: input, shape index: {}]   ;;  %s715_s1 = inlined_call_operand.hbm [shape: f32[1,4,128], index: 1, kind: input, shape index: {}]   ;;  %s716_s2 = inlined_call_operand.hbm [shape: f32[2,4,128], index: 2, kind: output, shape index: {}]  }
   0x1   :  { %9 = vsyncpa [#allocation3 + $0x1], 0 }
   0x2   :  { %10 = vsyncpa [#allocation6], 0 }
   0x3   :  { %11 = vsyncpa [#allocation4], 0 }
   0x4   :  { %13 = vsyncpa [#allocation4 + $0x1], 0  ;;  %s565_s9 = smov 0   ;;  %s567_s10 = smov 0  }
   0x5   :  { %s569_s11 = smov 0   ;;  %s571_s12 = smov 0  }
   0x6   :  { %s573_s13 = smov 0   ;;  %s575_s14 = smov 0  }
   0x7 LB: > { %s313_s15 = sadd.s32 4294967295, %s547_s14   ;;  %s314_s16 = sadd.s32 4294967294, %s547_s14   ;;  %s547_s14 = sphi %s575_s14, %s19_s14   ;;  %s543_s13 = sphi %s573_s13, %s728_s13   ;;  %s539_s12 = sphi %s571_s12, %s727_s12   ;;  %s535_s11 = sphi %s569_s11, %s726_s11   ;;  %s531_s10 = sphi %s567_s10, %s725_s10   ;;  %s527_s9 = sphi %s565_s9, %s724_s9  }
   0x8   : > { %p53_p0 = scmp.ne.s32.totalorder %s531_s10, %s527_s9  ;;  %p599_p1 = scmp.eq.s32.totalorder %s313_s15, 0 }
   0x9   : > { %p603_p2 = scmp.eq.s32.totalorder %s313_s15, 1  ;;  %p111_p3 = scmp.eq.s32.totalorder %s314_s16, 1 }
   0xa   : > { %p609_p4 = por %p599_p1, %p53_p0  ;;  %p315_p5 = scmp.ge.s32.totalorder %s547_s14, 1 }
   0xb   : > { %p614_p6 = por %p111_p3, %p53_p0  ;;  %p118_p7 = scmp.lt.s32.totalorder %s547_s14, 3 }
   0xc   : > { %s132_s23 = sshll.u32 %s715_s1, 4  ;;  %p317_p9 = scmp.ge.s32.totalorder %s547_s14, 2  ;;  %s133_s23 = int_to_ptr.hbm [resolvable:$true] %s132_s23 }
   0xd   : > { %p622_p8 = pnand %p315_p5, %p118_p7  ;;  %s549_s25 = smov [#allocation5]  }
   0xe   : > { %s134_s26 = sshll.u32 %s549_s25, 4  ;;  %s28_s27 = sadd.s32 1, %s543_s13  ;;  %s135_s26 = int_to_ptr.vmem [resolvable:$true] %s134_s26 }
   0xf   : > { %p336_p10 = pneg %p622_p8  ;;  %p29_p12 = scmp.ge.s32.totalorder %s28_s27, 2 }
  0x10   : > { %s40_s28 = sadd.s32 1, %s535_s11  ;;  %p47_p13 = scmp.ne.s32.totalorder %s535_s11, %s531_s10 }
  0x11   : > { %p337_p11 = pnand %p336_p10, %p599_p1  ;;  %p48_p0 = scmp.eq.s32.totalorder %s547_s14, 0 }
  0x12   : > { %s730_s27 = smov (%p29_p12, %s28_s27), 0  ;;  %p644_p5 = por %p603_p2, %p47_p13 }
  0x13   : > { %339 = dma.hbm_to_vmem [thread:$0]  (!%p337_p11), %s133_s23, 64, %s135_s26, [#allocation6]  }
  0x14   : > { %p638_p3 = por %p48_p0, %p47_p13  ;;  %s35_s3 = ssub.s32 %s543_s13, %s730_s27 }
  0x15   : > { %p349_p7 = scmp.lt.s32.totalorder %s547_s14, 2  ;;  %p38_p10 = scmp.eq.s32.totalorder %s35_s3, 0 }
  0x16   : > { %s145_s4 = sand.u32 1, %s535_s11   ;;  %s319_s7 = sshll.u32 %s543_s13, 2 }
  0x17   : > { %s318_s5 = sshll.u32 %s145_s4, 2  ;;  %s154_s16 = scalar_lea.hbm %s714_s0, %s319_s7 }
  0x18   : > { %s653_s6 = scalar_select %p38_p10, %s535_s11, %s40_s28  }
  0x19   : > { %s149_s21 = scalar_lea.vmem [#allocation2], %s318_s5  ;;  %s156_s18 = sshll.u32 %s154_s16, 4  ;;  %s157_s18 = int_to_ptr.hbm [resolvable:$true] %s156_s18 }
  0x1a   : > { %s158_s22 = sshll.u32 %s149_s21, 4  ;;  %p341_p2 = pnand %p349_p7, %p638_p3  ;;  %s159_s22 = int_to_ptr.vmem [resolvable:$true] %s158_s22 }
  0x1b   : > { %s146_s23 = scalar_lea.sflag [#allocation3], %s145_s4  ;;  %167 = sbr.rel (%p622_p8) target bundleno = 50 (0x32), region = 28 }
  0x1c   : > { %343 = dma.hbm_to_vmem [thread:$0]  (!%p341_p2), %s157_s18, 64, %s159_s22, %s146_s23  }
  0x1d   : > { %s664_s25 = sand.u32 (!%p622_p8), 1, %s531_s10  }
  0x1e   : > { %s321_s26 = sshll.u32 (!%p622_p8), %s664_s25, 2  ;;  %s170_s28 = scalar_lea.sflag (!%p622_p8), [#allocation3], %s664_s25 }
  0x1f   : > { %s173_s3 = scalar_lea.vmem (!%p622_p8), [#allocation2], %s321_s26 }
  0x20   : > { %514 = dma.done.wait (%p609_p4), %s170_s28, 64  }
  0x21   : > { %516 = vsyncadd (%p609_p4), %s170_s28, 4294967232 }
  0x22   : > { %518 = dma.done.wait (%p599_p1), [#allocation6], 64  }
  0x23   : > { %520 = vsyncadd (%p599_p1), [#allocation6], 4294967232  ;;  %s325_s24 = sshll.u32 %s539_s12, 2  ;;  %s199_s7 = scalar_lea.vmem [#allocation7], %s321_s26  ;;  %v200_v0 = vld [vmem:[%s173_s3] sm:$0xf] }
  0x24   : > { %s216_s5 = scalar_lea.hbm %s716_s2, %s325_s24  ;;  %s218_s8 = sshll.u32 %s199_s7, 4  ;;  %v201_v1 = vld [vmem:[#allocation5] sm:$0xf]  ;;  %s219_s8 = int_to_ptr.vmem [resolvable:$true] %s218_s8 }
  0x25   : > { %s220_s15 = sshll.u32 %s216_s5, 4  ;;  %v202_v2 = vadd.f32 %v201_v1, %v200_v0  ;;  %s205_s19 = scalar_lea.sflag [#allocation4], %s664_s25  ;;  %s221_s15 = int_to_ptr.hbm [resolvable:$true] %s220_s15 }
  0x26   : > { %s475_s17 = sshra.s32 %s221_s15, 4  ;;  %s481_s22 = scalar_lea.hbm %s716_s2, 8  ;;  %s476_s17 = int_to_ptr.hbm [resolvable:$true] %s475_s17 }
  0x27   : > { %203 = vst [vmem:[%s199_s7] sm:$0xf] %v202_v2  ;;  %s477_s16 = scalar_lea.hbm %s476_s17, 4  ;;  %p482_p11 = scmp.lt.s32.totalorder %s476_s17, %s716_s2 }
  0x28   : > { %p478_p1 = scmp.ne.s32.totalorder %s476_s17, %s477_s16  ;;  %p483_p12 = scmp.lt.s32.totalorder %s481_s22, %s477_s16 }
  0x2a   : > { %p479_p4 = pnand %p478_p1, %p644_p5  ;;  %p484_p13 = por %p483_p12, %p482_p11 }
  0x2c   : > { %p480_p8 = pneg %p479_p4 }
  0x2e   : > { %p485_p0 = pnand %p484_p13, %p480_p8 }
  0x30   : > { %488 = shalt.err (!%p485_p0)
}
  0x31   : > { %334 = dma.vmem_to_hbm [thread:$0]  (%p644_p5), %s219_s8, 64, %s221_s15, %s205_s19  }
  0x32 PF: > { %s232_s25 = sand.u32 1, %s527_s9   ;;  %p345_p3 = pnand %p317_p9, %p614_p6 }
  0x33   : > { %s233_s26 = scalar_lea.sflag [#allocation4], %s232_s25 }
  0x34   : > { %p346_p7 = pneg %p345_p3 }
  0x36   : > { %522 = dma.done.wait (%p346_p7), %s233_s26, 64  }
  0x37   : > { %524 = vsyncadd (%p346_p7), %s233_s26, 4294967232  ;;  %s19_s14 = sadd.s32 1, %s547_s14   ;;  %s724_s9 = smov %s531_s10 }
  0x38   : > { %p16_p10 = scmp.ge.s32.totalorder %s19_s14, 4   ;;  %s725_s10 = smov %s535_s11 }
  0x39   : > { %s726_s11 = smov %s653_s6  ;;  %s727_s12 = smov %s543_s13 }
  0x3a   : > { %s728_s13 = smov %s730_s27  ;;  %18 = sbr.rel (!%p16_p10) target bundleno = 7 (0x7), region = 78 }
  0x3f   :  { %239 = vsyncpa [#allocation3], 1 }
  0x40   :  { %241 = vsyncpa [#allocation3 + $0x1], 1 }
  0x41   :  { %242 = vsyncpa [#allocation6], 1 }
  0x42   :  { %243 = vsyncpa [#allocation4], 1 }
  0x43   :  { %245 = vsyncpa [#allocation4 + $0x1], 1 }

</bundles_post_ra>
